<compile_context>
chip_gen: v6e
topology: v6e:2x2x1
jax: 0.10.0
libtpu: 0.0.40
codegen_flags: <defaults>
</compile_context>

<pallas_src>
import jax
import jax.numpy as jnp
from jax.experimental import pallas as pl
from jax.experimental.pallas import tpu as pltpu

# ----------------------------- problem sizes --------------------------------
B = 2              # graphs per batch
N = 16             # nodes per graph (dense padding)
F = 4              # dim_features
H = 32             # hidden_dim  (== dim_targets in GTL)
NUM_TRANS = 4      # config['num_trans']  -> number of independent GIN heads
T = H              # dim_targets = config['hidden_dim']
C = NUM_TRANS * H  # fused channel width = 128 (lane-dense)
M = B * N          # total node rows across the batch = 32


# ------------------------------ Pallas kernel -------------------------------
def gtl_kernel(x_ref, abd_ref, p_ref, w1_ref, wbd_ref, b_ref, out_ref):
    """Whole GTL forward (all graphs, all num_trans heads), fully 2-D.

    x_ref  : (M, F)     bf16  flattened node features (graph-major rows)
    abd_ref: (M, M)     bf16  block-diag(A_b + I) over graphs (eps=0 folded)
    p_ref  : (B, M)     bf16  0/1 pooling matrix: pooled = P @ H
    w1_ref : (F, C)     bf16  layer-1 first linear, heads concatenated on lanes
    wbd_ref: (4, C, C)  bf16  block-diag [w2, w3, w4, w_readout] per head
    b_ref  : (5, C)     f32   biases [b1, b2, b3, b4, b_readout] (one tile)
    out_ref: (B, C)     f32   logits, lanes ordered [head0 | head1 | ...]
    """
    abd = abd_ref[...]                                                # (M, M)

    # ---- GIN layer 1 (reassociated): (A+I) @ (X @ W1), all heads at once ---
    xw = jnp.dot(x_ref[...], w1_ref[...],
                 preferred_element_type=jnp.float32)                  # (M, C)
    h = jnp.dot(abd, xw.astype(jnp.bfloat16),
                preferred_element_type=jnp.float32)                   # (M, C)
    h = jnp.maximum(h + b_ref[0:1, :], 0.0)
    h = jnp.dot(h.astype(jnp.bfloat16), wbd_ref[0],
                preferred_element_type=jnp.float32)
    h = jnp.maximum(h + b_ref[1:2, :], 0.0)                           # (M, C)

    # ---- GIN layer 2: (A+I) @ H, then block-diagonal MLP --------------------
    agg = jnp.dot(abd, h.astype(jnp.bfloat16),
                  preferred_element_type=jnp.float32)                 # (M, C)
    h = jnp.dot(agg.astype(jnp.bfloat16), wbd_ref[1],
                preferred_element_type=jnp.float32)
    h = jnp.maximum(h + b_ref[2:3, :], 0.0)
    h = jnp.dot(h.astype(jnp.bfloat16), wbd_ref[2],
                preferred_element_type=jnp.float32)
    h = jnp.maximum(h + b_ref[3:4, :], 0.0)                           # (M, C)

    # ---- global sum pooling (MXU matmul) + block-diag per-head readout ------
    pooled = jnp.dot(p_ref[...], h.astype(jnp.bfloat16),
                     preferred_element_type=jnp.float32)              # (B, C)
    out_ref[...] = jnp.dot(pooled.astype(jnp.bfloat16), wbd_ref[3],
                           preferred_element_type=jnp.float32) + b_ref[4:5, :]


# ------------------------------ wrapper --------------------------------------
def gtl_forward(x_flat, abd, pool, params):
    """GTL.forward: every GIN head on the same graph batch, stacked on dim 1."""
    w1c, wbd, biases = params

    full0 = lambda shp: pl.BlockSpec(shp, lambda i: (0,) * len(shp))

    out = pl.pallas_call(
        gtl_kernel,
        out_shape=jax.ShapeDtypeStruct((B, C), jnp.float32),
        grid_spec=pltpu.PrefetchScalarGridSpec(
            num_scalar_prefetch=0,
            grid=(1,),                    # single fused step, no pipeline overhead
            in_specs=[
                full0((M, F)),            # X (flattened)
                full0((M, M)),            # block-diag(A + I)
                full0((B, M)),            # pooling matrix P
                full0(w1c.shape),         # (F, C)
                full0(wbd.shape),         # (4, C, C)
                full0(biases.shape),      # (5, C)
            ],
            out_specs=full0((B, C)),      # one lane-dense (2,128) store
        ),
        compiler_params=pltpu.CompilerParams(
            dimension_semantics=("arbitrary",)),
    )(x_flat, abd, pool, w1c, wbd, biases)

    # lanes are head-major, so a reshape reproduces torch.cat(dim=1)
    return out.reshape(B, NUM_TRANS, T)   # (B, num_trans, dim_targets)


def prepare_graph_inputs(x, a):
    """Loop-invariant graph prep, done once OUTSIDE the kernel call.

    Folds the eps=0 self term (A + I), builds the block-diagonal adjacency
    over the B graphs and the 0/1 pooling matrix, flattens X to 2-D, and
    casts everything to bf16 (MXU-native) for the kernel.
    """
    ai = a + jnp.eye(N, dtype=a.dtype)[None, :, :]           # (B, N, N)
    abd = jnp.zeros((M, M), jnp.float32)
    for b in range(B):
        abd = abd.at[b * N:(b + 1) * N, b * N:(b + 1) * N].set(ai[b])
    pool = jnp.kron(jnp.eye(B, dtype=jnp.float32),
                    jnp.ones((1, N), jnp.float32))           # (B, M)
    x_flat = x.reshape(M, F)
    return (x_flat.astype(jnp.bfloat16),
            abd.astype(jnp.bfloat16),
            pool.astype(jnp.bfloat16))


# ------------------------------ parameter init -------------------------------
def _block_diag(mats):
    r, c = mats[0].shape
    out = jnp.zeros((len(mats) * r, len(mats) * c), mats[0].dtype)
    for i, m in enumerate(mats):
        out = out.at[i * r:(i + 1) * r, i * c:(i + 1) * c].set(m)
    return out


def init_params(key):
    """Build NUM_TRANS independent GIN parameter sets and pack them once."""
    def lin(k, fan_in, fan_out):
        scale = 1.0 / jnp.sqrt(jnp.float32(fan_in))
        w = jax.random.uniform(k, (fan_in, fan_out), jnp.float32, -scale, scale)
        b = jax.random.uniform(jax.random.fold_in(k, 1), (fan_out,),
                               jnp.float32, -scale, scale)
        return w, b

    heads = []
    for v, kv in enumerate(jax.random.split(key, NUM_TRANS)):
        ks = jax.random.split(kv, 5)
        heads.append({
            'w1': lin(ks[0], F, H),   # GIN layer 1 MLP
            'w2': lin(ks[1], H, H),
            'w3': lin(ks[2], H, H),   # GIN layer 2 MLP
            'w4': lin(ks[3], H, H),
            'wc': lin(ks[4], H, T),   # linear readout
        })

    # layer-1 input weight: heads concatenated along output lanes  (F, C)
    w1c = jnp.concatenate([h['w1'][0] for h in heads], axis=1)
    # remaining linears: block-diagonal so one matmul == all per-head matmuls
    wbd = jnp.stack([_block_diag([h[name][0] for h in heads])
                     for name in ('w2', 'w3', 'w4', 'wc')], axis=0)    # (4, C, C)
    # biases: single (5, C) operand -> one (8,128) VMEM tile
    biases = jnp.stack([jnp.concatenate([h[name][1] for h in heads], axis=0)
                        for name in ('w1', 'w2', 'w3', 'w4', 'wc')],
                       axis=0)                                         # (5, C)
    return (w1c.astype(jnp.bfloat16),
            wbd.astype(jnp.bfloat16),
            biases.astype(jnp.float32))


# ----------------------------------- main ------------------------------------
if __name__ == "__main__":
    key = jax.random.PRNGKey(0)
    kx, ka, kp = jax.random.split(key, 3)

    # node features
    x = jax.random.normal(kx, (B, N, F), jnp.float32)
    # random symmetric adjacency, no self loops
    au = (jax.random.uniform(ka, (B, N, N)) < 0.3).astype(jnp.float32)
    au = jnp.triu(au, 1)
    a = au + jnp.swapaxes(au, 1, 2)

    params = init_params(kp)
    x_flat, abd, pool = prepare_graph_inputs(x, a)

    out = gtl_forward(x_flat, abd, pool, params)
    out = jax.block_until_ready(out)
    assert out.shape == (B, NUM_TRANS, T), out.shape
    assert bool(jnp.all(jnp.isfinite(out)))
    print("KERNEL_OK")
</pallas_src>

<mosaic_0001>
module attributes {stable_mosaic.version = 11 : i64} {
  func.func @gtl_kernel(%arg0: i32, %arg1: memref<32x4xbf16, #tpu.memory_space<vmem>>, %arg2: memref<32x32xbf16, #tpu.memory_space<vmem>>, %arg3: memref<2x32xbf16, #tpu.memory_space<vmem>>, %arg4: memref<4x128xbf16, #tpu.memory_space<vmem>>, %arg5: memref<4x128x128xbf16, #tpu.memory_space<vmem>>, %arg6: memref<5x128xf32, #tpu.memory_space<vmem>>, %arg7: memref<2x128xf32, #tpu.memory_space<vmem>>) attributes {dimension_semantics = [#tpu.dimension_semantics<arbitrary>], iteration_bounds = array<i64: 1>, scalar_prefetch = 0 : i64, scratch_operands = 0 : i64, tpu.core_type = #tpu.core_type<tc>, window_params = [{pipeline_mode = #tpu.pipeline_mode<synchronous>, transform_indices = @transform_0, window_bounds = array<i64: 32, 4>}, {pipeline_mode = #tpu.pipeline_mode<synchronous>, transform_indices = @transform_1, window_bounds = array<i64: 32, 32>}, {pipeline_mode = #tpu.pipeline_mode<synchronous>, transform_indices = @transform_2, window_bounds = array<i64: 2, 32>}, {pipeline_mode = #tpu.pipeline_mode<synchronous>, transform_indices = @transform_3, window_bounds = array<i64: 4, 128>}, {pipeline_mode = #tpu.pipeline_mode<synchronous>, transform_indices = @transform_4, window_bounds = array<i64: 4, 128, 128>}, {pipeline_mode = #tpu.pipeline_mode<synchronous>, transform_indices = @transform_5, window_bounds = array<i64: 5, 128>}, {pipeline_mode = #tpu.pipeline_mode<synchronous>, transform_indices = @transform_6, window_bounds = array<i64: 2, 128>}]} {
    %c0 = arith.constant 0 : index
    %c0_0 = arith.constant 0 : index
    %0 = vector.load %arg2[%c0, %c0_0] : memref<32x32xbf16, #tpu.memory_space<vmem>>, vector<32x32xbf16>
    %c0_1 = arith.constant 0 : index
    %c0_2 = arith.constant 0 : index
    %1 = vector.load %arg1[%c0_1, %c0_2] : memref<32x4xbf16, #tpu.memory_space<vmem>>, vector<32x4xbf16>
    %c0_3 = arith.constant 0 : index
    %c0_4 = arith.constant 0 : index
    %2 = vector.load %arg4[%c0_3, %c0_4] : memref<4x128xbf16, #tpu.memory_space<vmem>>, vector<4x128xbf16>
    %cst = arith.constant dense<0.000000e+00> : vector<32x128xf32>
    %3 = tpu.matmul %1, %2, %cst {dimension_numbers = #tpu.dot_dimension_numbers<[1], [0], [0], [1], [0, 0, 1, 1], [], []>} : vector<32x4xbf16>, vector<4x128xbf16>, vector<32x128xf32> -> vector<32x128xf32>
    %4 = arith.truncf %3 : vector<32x128xf32> to vector<32x128xbf16>
    %cst_5 = arith.constant dense<0.000000e+00> : vector<32x128xf32>
    %5 = tpu.matmul %0, %4, %cst_5 {dimension_numbers = #tpu.dot_dimension_numbers<[1], [0], [0], [1], [0, 0, 1, 1], [], []>} : vector<32x32xbf16>, vector<32x128xbf16>, vector<32x128xf32> -> vector<32x128xf32>
    %c0_6 = arith.constant 0 : index
    %c0_7 = arith.constant 0 : index
    %6 = vector.load %arg6[%c0_6, %c0_7] : memref<5x128xf32, #tpu.memory_space<vmem>>, vector<1x128xf32>
    %7 = vector.broadcast %6 : vector<1x128xf32> to vector<32x128xf32>
    %8 = arith.addf %5, %7 : vector<32x128xf32>
    %cst_8 = arith.constant 0.000000e+00 : f32
    %9 = vector.broadcast %cst_8 : f32 to vector<32x128xf32>
    %10 = arith.maximumf %8, %9 : vector<32x128xf32>
    %11 = arith.truncf %10 : vector<32x128xf32> to vector<32x128xbf16>
    %c0_9 = arith.constant 0 : index
    %c0_10 = arith.constant 0 : index
    %c0_11 = arith.constant 0 : index
    %12 = vector.load %arg5[%c0_9, %c0_10, %c0_11] : memref<4x128x128xbf16, #tpu.memory_space<vmem>>, vector<1x128x128xbf16>
    %13 = vector.shape_cast %12 : vector<1x128x128xbf16> to vector<128x128xbf16>
    %cst_12 = arith.constant dense<0.000000e+00> : vector<32x128xf32>
    %14 = tpu.matmul %11, %13, %cst_12 {dimension_numbers = #tpu.dot_dimension_numbers<[1], [0], [0], [1], [0, 0, 1, 1], [], []>} : vector<32x128xbf16>, vector<128x128xbf16>, vector<32x128xf32> -> vector<32x128xf32>
    %c1 = arith.constant 1 : index
    %c0_13 = arith.constant 0 : index
    %15 = vector.load %arg6[%c1, %c0_13] : memref<5x128xf32, #tpu.memory_space<vmem>>, vector<1x128xf32>
    %16 = vector.broadcast %15 : vector<1x128xf32> to vector<32x128xf32>
    %17 = arith.addf %14, %16 : vector<32x128xf32>
    %cst_14 = arith.constant 0.000000e+00 : f32
    %18 = vector.broadcast %cst_14 : f32 to vector<32x128xf32>
    %19 = arith.maximumf %17, %18 : vector<32x128xf32>
    %20 = arith.truncf %19 : vector<32x128xf32> to vector<32x128xbf16>
    %cst_15 = arith.constant dense<0.000000e+00> : vector<32x128xf32>
    %21 = tpu.matmul %0, %20, %cst_15 {dimension_numbers = #tpu.dot_dimension_numbers<[1], [0], [0], [1], [0, 0, 1, 1], [], []>} : vector<32x32xbf16>, vector<32x128xbf16>, vector<32x128xf32> -> vector<32x128xf32>
    %22 = arith.truncf %21 : vector<32x128xf32> to vector<32x128xbf16>
    %c1_16 = arith.constant 1 : index
    %c0_17 = arith.constant 0 : index
    %c0_18 = arith.constant 0 : index
    %23 = vector.load %arg5[%c1_16, %c0_17, %c0_18] : memref<4x128x128xbf16, #tpu.memory_space<vmem>>, vector<1x128x128xbf16>
    %24 = vector.shape_cast %23 : vector<1x128x128xbf16> to vector<128x128xbf16>
    %cst_19 = arith.constant dense<0.000000e+00> : vector<32x128xf32>
    %25 = tpu.matmul %22, %24, %cst_19 {dimension_numbers = #tpu.dot_dimension_numbers<[1], [0], [0], [1], [0, 0, 1, 1], [], []>} : vector<32x128xbf16>, vector<128x128xbf16>, vector<32x128xf32> -> vector<32x128xf32>
    %c2 = arith.constant 2 : index
    %c0_20 = arith.constant 0 : index
    %26 = vector.load %arg6[%c2, %c0_20] : memref<5x128xf32, #tpu.memory_space<vmem>>, vector<1x128xf32>
    %27 = vector.broadcast %26 : vector<1x128xf32> to vector<32x128xf32>
    %28 = arith.addf %25, %27 : vector<32x128xf32>
    %cst_21 = arith.constant 0.000000e+00 : f32
    %29 = vector.broadcast %cst_21 : f32 to vector<32x128xf32>
    %30 = arith.maximumf %28, %29 : vector<32x128xf32>
    %31 = arith.truncf %30 : vector<32x128xf32> to vector<32x128xbf16>
    %c2_22 = arith.constant 2 : index
    %c0_23 = arith.constant 0 : index
    %c0_24 = arith.constant 0 : index
    %32 = vector.load %arg5[%c2_22, %c0_23, %c0_24] : memref<4x128x128xbf16, #tpu.memory_space<vmem>>, vector<1x128x128xbf16>
    %33 = vector.shape_cast %32 : vector<1x128x128xbf16> to vector<128x128xbf16>
    %cst_25 = arith.constant dense<0.000000e+00> : vector<32x128xf32>
    %34 = tpu.matmul %31, %33, %cst_25 {dimension_numbers = #tpu.dot_dimension_numbers<[1], [0], [0], [1], [0, 0, 1, 1], [], []>} : vector<32x128xbf16>, vector<128x128xbf16>, vector<32x128xf32> -> vector<32x128xf32>
    %c3 = arith.constant 3 : index
    %c0_26 = arith.constant 0 : index
    %35 = vector.load %arg6[%c3, %c0_26] : memref<5x128xf32, #tpu.memory_space<vmem>>, vector<1x128xf32>
    %36 = vector.broadcast %35 : vector<1x128xf32> to vector<32x128xf32>
    %37 = arith.addf %34, %36 : vector<32x128xf32>
    %cst_27 = arith.constant 0.000000e+00 : f32
    %38 = vector.broadcast %cst_27 : f32 to vector<32x128xf32>
    %39 = arith.maximumf %37, %38 : vector<32x128xf32>
    %c0_28 = arith.constant 0 : index
    %c0_29 = arith.constant 0 : index
    %40 = vector.load %arg3[%c0_28, %c0_29] : memref<2x32xbf16, #tpu.memory_space<vmem>>, vector<2x32xbf16>
    %41 = arith.truncf %39 : vector<32x128xf32> to vector<32x128xbf16>
    %cst_30 = arith.constant dense<0.000000e+00> : vector<2x128xf32>
    %42 = tpu.matmul %40, %41, %cst_30 {dimension_numbers = #tpu.dot_dimension_numbers<[1], [0], [0], [1], [0, 0, 1, 1], [], []>} : vector<2x32xbf16>, vector<32x128xbf16>, vector<2x128xf32> -> vector<2x128xf32>
    %43 = arith.truncf %42 : vector<2x128xf32> to vector<2x128xbf16>
    %c3_31 = arith.constant 3 : index
    %c0_32 = arith.constant 0 : index
    %c0_33 = arith.constant 0 : index
    %44 = vector.load %arg5[%c3_31, %c0_32, %c0_33] : memref<4x128x128xbf16, #tpu.memory_space<vmem>>, vector<1x128x128xbf16>
    %45 = vector.shape_cast %44 : vector<1x128x128xbf16> to vector<128x128xbf16>
    %cst_34 = arith.constant dense<0.000000e+00> : vector<2x128xf32>
    %46 = tpu.matmul %43, %45, %cst_34 {dimension_numbers = #tpu.dot_dimension_numbers<[1], [0], [0], [1], [0, 0, 1, 1], [], []>} : vector<2x128xbf16>, vector<128x128xbf16>, vector<2x128xf32> -> vector<2x128xf32>
    %c4 = arith.constant 4 : index
    %c0_35 = arith.constant 0 : index
    %47 = vector.load %arg6[%c4, %c0_35] : memref<5x128xf32, #tpu.memory_space<vmem>>, vector<1x128xf32>
    %48 = vector.broadcast %47 : vector<1x128xf32> to vector<2x128xf32>
    %49 = arith.addf %46, %48 : vector<2x128xf32>
    %c0_36 = arith.constant 0 : index
    %c0_37 = arith.constant 0 : index
    %50 = vector.load %arg7[%c0_36, %c0_37] : memref<2x128xf32, #tpu.memory_space<vmem>>, vector<2x128xf32>
    tpu.vector_store %arg7[%c0_36, %c0_37], %49 {strides = array<i32>} : memref<2x128xf32, #tpu.memory_space<vmem>>, vector<2x128xf32>,
    return
  }
  func.func @transform_0(%arg0: i32) -> (i32, i32) {
    %c0_i32 = arith.constant 0 : i32
    %c0_i32_0 = arith.constant 0 : i32
    %c0_i32_1 = arith.constant 0 : i32
    return %c0_i32, %c0_i32_0 : i32, i32
  }
  func.func @transform_1(%arg0: i32) -> (i32, i32) {
    %c0_i32 = arith.constant 0 : i32
    %c0_i32_0 = arith.constant 0 : i32
    %c0_i32_1 = arith.constant 0 : i32
    return %c0_i32, %c0_i32_0 : i32, i32
  }
  func.func @transform_2(%arg0: i32) -> (i32, i32) {
    %c0_i32 = arith.constant 0 : i32
    %c0_i32_0 = arith.constant 0 : i32
    %c0_i32_1 = arith.constant 0 : i32
    return %c0_i32, %c0_i32_0 : i32, i32
  }
  func.func @transform_3(%arg0: i32) -> (i32, i32) {
    %c0_i32 = arith.constant 0 : i32
    %c0_i32_0 = arith.constant 0 : i32
    %c0_i32_1 = arith.constant 0 : i32
    return %c0_i32, %c0_i32_0 : i32, i32
  }
  func.func @transform_4(%arg0: i32) -> (i32, i32, i32) {
    %c0_i32 = arith.constant 0 : i32
    %c0_i32_0 = arith.constant 0 : i32
    %c0_i32_1 = arith.constant 0 : i32
    %c0_i32_2 = arith.constant 0 : i32
    return %c0_i32, %c0_i32_0, %c0_i32_1 : i32, i32, i32
  }
  func.func @transform_5(%arg0: i32) -> (i32, i32) {
    %c0_i32 = arith.constant 0 : i32
    %c0_i32_0 = arith.constant 0 : i32
    %c0_i32_1 = arith.constant 0 : i32
    return %c0_i32, %c0_i32_0 : i32, i32
  }
  func.func @transform_6(%arg0: i32) -> (i32, i32) {
    %c0_i32 = arith.constant 0 : i32
    %c0_i32_0 = arith.constant 0 : i32
    %c0_i32_1 = arith.constant 0 : i32
    return %c0_i32, %c0_i32_0 : i32, i32
  }
}

</mosaic_0001>

<bundles_post_ra>
// kernel: tpu_custom_call.1
= control target key start
LH: loop header
LB: loop body
LE: loop exit
PB: predicated region body
PF: predicated region fallthrough
CT: control target
= control target key end

     0   :  { %11 = vsyncpa [#allocation3], 0  ;;  %s1219_s0 = inlined_call_operand.vmem [shape: bf16[32,4], index: 0, kind: input, shape index: {}]   ;;  %s1220_s1 = inlined_call_operand.vmem [shape: bf16[32,32], index: 1, kind: input, shape index: {}]   ;;  %s1221_s2 = inlined_call_operand.vmem [shape: bf16[2,32], index: 2, kind: input, shape index: {}]   ;;  %s1222_s3 = inlined_call_operand.hbm [shape: bf16[4,128], index: 3, kind: input, shape index: {}]   ;;  %s1223_s4 = inlined_call_operand.hbm [shape: bf16[4,128,128], index: 4, kind: input, shape index: {}]   ;;  %s1224_s5 = inlined_call_operand.vmem [shape: f32[5,128], index: 5, kind: input, shape index: {}]   ;;  %s1225_s6 = inlined_call_operand.hbm [shape: f32[2,128], index: 6, kind: output, shape index: {}]  }
   0x1   :  { %12 = vsyncpa [#allocation6], 0 }
   0x2   :  { %13 = vsyncpa [#allocation4], 0  ;;  %s1127_s21 = smov [#allocation2]   ;;  %s1128_s23 = smov [#allocation5]  }
   0x3   :  { %s26_s22 = sshll.u32 %s1127_s21, 4  ;;  %s35_s24 = sshll.u32 %s1128_s23, 4  ;;  %s27_s22 = int_to_ptr.vmem [resolvable:$true] %s26_s22  ;;  %s36_s24 = int_to_ptr.vmem [resolvable:$true] %s35_s24 }
   0x4   :  { %s1069_s25 = scalar_lea.vmem %s27_s22, 32  ;;  %p1074_p1 = scmp.lt.s32.totalorder %s27_s22, %s27_s22 }
   0x5   :  { %p1070_p0 = scmp.ne.s32.totalorder %s27_s22, %s1069_s25  ;;  %p1075_p2 = scmp.lt.s32.totalorder %s1069_s25, %s1069_s25 }
   0x7   :  { %p1076_p3 = por %p1075_p2, %p1074_p1 }
   0x9   :  { %p1077_p4 = pnand %p1076_p3, %p1070_p0 }
   0xb   :  { %1080 = shalt.err (!%p1077_p4)
}
   0xc   :  { %29 = dma.hbm_to_vmem [thread:$0]  %s1222_s3, 32, %s27_s22, [#allocation3]  }
   0xd   :  { %s1089_s28 = scalar_lea.vmem %s36_s24, 4096  ;;  %p1094_p6 = scmp.lt.s32.totalorder %s36_s24, %s36_s24 }
   0xe   :  { %p1090_p5 = scmp.ne.s32.totalorder %s36_s24, %s1089_s28  ;;  %p1095_p7 = scmp.lt.s32.totalorder %s1089_s28, %s1089_s28 }
  0x10   :  { %p1096_p8 = por %p1095_p7, %p1094_p6 }
  0x12   :  { %p1097_p9 = pnand %p1096_p8, %p1090_p5 }
  0x14   :  { %1100 = shalt.err (!%p1097_p9)
}
  0x15   :  { %s1129_s29 = smov 64   ;;  %s1130_s30 = smov 4  }
  0x16   :  { %41 = dma.hbm_to_vmem [thread:$0]  %s1223_s4, 4096, %s36_s24, [#allocation6], %s1129_s29, %s1129_s29, %s1130_s30  }
  0x17   :  { %1121 = dma.done.wait [#allocation3], 32  }
  0x18   :  { %1122 = vsyncadd [#allocation3], 4294967264 }
  0x19   :  { %1123 = dma.done.wait [#allocation6], 4096  }
  0x1a   :  { %1124 = vsyncadd [#allocation6], 4294963200  ;;  %vm77_vm0 = vcmask 1041408   ;;  %vm70_vm1 = vcmask 31744   ;;  %v59_v0 = vld [vmem:[#allocation2] sm:$0x3] }
  0x1b   :  { %1017 = vmatprep.subr.msk.bf16.mxu0 %vm77_vm0, %v59_v0  ;;  %v79_v1 = vsel %vm77_vm0, %v59_v0, 0  ;;  %v1025_v2 = vld [vmem:[%s1219_s0] sm:$0xff]   ;;  %v1026_v3 = vld [vmem:[%s1219_s0 + $0x8] sm:$0xff]   ;;  %vm147_vm2 = vcmask 261120   ;;  %v1030_v13 = vld [vmem:[#allocation5 + $0x30] sm:$0xff]   ;;  %vm1132_vm3 = vmmov 0  }
  0x1c   :  { %908 = vmatpush3.bf16.msra.mxu0 %v79_v1  ;;  %909 = vmatprep.mubr.msk.bf16.mxu0 %vm70_vm1, %v1025_v2  ;;  %v1027_v4 = vld [vmem:[%s1220_s1] sm:$0xff]   ;;  %v1189_v12 = vld [vmem:[%s1220_s1 + $0x8] sm:$0xff]   ;;  %v1034_v17 = vld [vmem:[#allocation5 + $0x10] sm:$0xff]   ;;  %s1133_s24 = smov [#allocation7]  }
  0x1d   :  { %945 = vmatprep.mubr.msk.bf16.mxu1 %vm147_vm2, %v1027_v4  ;;  %v1029_v11 = vld [vmem:[#allocation5 + $0x38] sm:$0xff]   ;;  %v1031_v14 = vld [vmem:[#allocation5 + $0x28] sm:$0xff]   ;;  %v1032_v15 = vld [vmem:[#allocation5 + $0x20] sm:$0xff]   ;;  %s796_s25 = sshll.u32 %s1133_s24, 4  ;;  %s797_s25 = int_to_ptr.vmem [resolvable:$true] %s796_s25 }
  0x1e   :  { %v1033_v16 = vld [vmem:[#allocation5 + $0x18] sm:$0xff]   ;;  %v1035_v18 = vld [vmem:[#allocation5 + $0x8] sm:$0xff]   ;;  %v1036_v19 = vld [vmem:[#allocation5] sm:$0xff]   ;;  %s1101_s26 = scalar_lea.vmem %s797_s25, 32  ;;  %p1106_p11 = scmp.lt.s32.totalorder %s797_s25, %s797_s25 }
  0x1f   :  { %910 = vmatmul.mubr.msk.bf16.vlgmr.msra.gmra.mxu0 %vm70_vm1, %v1026_v3  ;;  %v810_v22 = vld [vmem:[%s1224_s5] ss:$0 sm:$0xff]  ;;  %v815_v36 = vld [vmem:[%s1224_s5 + $0x1] ss:$0 sm:$0xff]  ;;  %v1038_v51 = vld [vmem:[#allocation5 + $0x70] sm:$0xff]   ;;  %p1102_p10 = scmp.ne.s32.totalorder %s797_s25, %s1101_s26  ;;  %p1107_p12 = scmp.lt.s32.totalorder %s1101_s26, %s1101_s26 }
  0x20   :  { %917 = vmatprep.mubr.msk.bf16.mxu0 %vm147_vm2, %v1027_v4  ;;  %v1037_v50 = vld [vmem:[#allocation5 + $0x78] sm:$0xff]   ;;  %v1039_v52 = vld [vmem:[#allocation5 + $0x68] sm:$0xff]   ;;  %v1040_v53 = vld [vmem:[#allocation5 + $0x60] sm:$0xff]  }
  0x21   :  { %v1041_v54 = vld [vmem:[#allocation5 + $0x58] sm:$0xff]   ;;  %v1042_v55 = vld [vmem:[#allocation5 + $0x50] sm:$0xff]   ;;  %v1043_v56 = vld [vmem:[#allocation5 + $0x48] sm:$0xff]   ;;  %p1108_p13 = por %p1107_p12, %p1106_p11 }
  0x22   :  { %v1044_v57 = vld [vmem:[#allocation5 + $0x40] sm:$0xff]   ;;  %v1045_v58 = vld [vmem:[#allocation5 + $0xb8] sm:$0xff]   ;;  %v1046_v59 = vld [vmem:[#allocation5 + $0xb0] sm:$0xff]  }
  0x23   :  { %v1047_v60 = vld [vmem:[#allocation5 + $0xa8] sm:$0xff]   ;;  %v1048_v61 = vld [vmem:[#allocation5 + $0xa0] sm:$0xff]   ;;  %v1049_v62 = vld [vmem:[#allocation5 + $0x98] sm:$0xff]   ;;  %p1109_p0 = pnand %p1108_p13, %p1102_p10 }
  0xdf   :  { %v911_v5 = vpop.f32.mrf.mxu0 }
  0xe1   :  { %v115_v6 = vpop.f32.mrf.mxu0 }
  0xe3   :  { %v912_v7 = vpop.f32.mrf.mxu0 }
  0xe4   :  { %v131_v8 = vpack.c.bf16 %v912_v7, %v911_v5  ;;  %v1050_v5 = vld [vmem:[#allocation5 + $0x90] sm:$0xff]   ;;  %v1052_v7 = vld [vmem:[#allocation5 + $0x80] sm:$0xff]  }
  0xe5   :  { %v118_v9 = vpop.f32.mrf.mxu0 }
  0xe6   :  { %v130_v10 = vpack.c.bf16 %v118_v9, %v115_v6  ;;  %913 = vmatprep.subr.bf16.mxu0 %v131_v8  ;;  %v1051_v6 = vld [vmem:[#allocation5 + $0x88] sm:$0xff]  }
  0xe7   :  { %914 = vmatpush3.bf16.msra.mxu0 %v131_v8 }
  0xe8   :  { %915 = vmatprep.subr.bf16.mxu0 %v130_v10 }
  0xeb   :  { %916 = vmatpush3.bf16.msra.mxu0 %v130_v10  ;;  %v826_v10 = vld [vmem:[%s1224_s5 + $0x2] ss:$0 sm:$0xff] }
  0xec   :  { %921 = vmatprep.subr.bf16.mxu0 %v1029_v11 }
  0xee   :  { %918 = vmatmul.mubr.msk.bf16.vlgmr.msra.gmra.mxu0 %vm147_vm2, %v1189_v12 }
  0xef   :  { %922 = vmatpush3.bf16.msra.mxu0 %v1029_v11 }
  0xf0   :  { %923 = vmatprep.subr.bf16.mxu0 %v1030_v13 }
  0xf3   :  { %924 = vmatpush3.bf16.msra.mxu0 %v1030_v13 }
  0xf4   :  { %925 = vmatprep.subr.bf16.mxu0 %v1031_v14 }
  0xf7   :  { %926 = vmatpush3.bf16.msra.mxu0 %v1031_v14 }
  0xf8   :  { %927 = vmatprep.subr.bf16.mxu0 %v1032_v15 }
  0xfb   :  { %928 = vmatpush3.bf16.msra.mxu0 %v1032_v15 }
  0xfc   :  { %929 = vmatprep.subr.bf16.mxu0 %v1033_v16 }
  0xff   :  { %930 = vmatpush3.bf16.msra.mxu0 %v1033_v16 }
 0x100   :  { %931 = vmatprep.subr.bf16.mxu0 %v1034_v17 }
 0x103   :  { %932 = vmatpush3.bf16.msra.mxu0 %v1034_v17 }
 0x104   :  { %933 = vmatprep.subr.bf16.mxu0 %v1035_v18 }
 0x107   :  { %934 = vmatpush3.bf16.msra.mxu0 %v1035_v18 }
 0x108   :  { %935 = vmatprep.subr.bf16.mxu0 %v1036_v19 }
 0x10b   :  { %936 = vmatpush3.bf16.msra.mxu0 %v1036_v19 }
 0x10c   :  { %969 = vmatprep.subr.bf16.mxu0 %v1045_v58 }
 0x1ae   :  { %v919_v20 = vpop.f32.mrf.mxu0 }
 0x1af   :  { %v197_v26 = vadd.f32 %v919_v20, %v810_v22 }
 0x1b0   :  { %v188_v21 = vpop.f32.mrf.mxu0 }
 0x1b1   :  { %v189_v24 = vadd.f32 %v810_v22, %v188_v21  ;;  %v205_v32 = vmax.f32 %v197_v26, 0.0 }
 0x1b2   :  { %v920_v23 = vpop.f32.mrf.mxu0 }
 0x1b3   :  { %v200_v25 = vadd.f32 %v920_v23, %v810_v22  ;;  %v203_v30 = vmax.f32 %v189_v24, 0.0  ;;  %v1131_v23 = vmov 0.0  }
 0x1b4   :  { %v191_v27 = vpop.f32.mrf.mxu0 }
 0x1b5   :  { %v192_v28 = vadd.f32 %v810_v22, %v191_v27  ;;  %v206_v29 = vmax.f32 %v200_v25, 0.0  ;;  %v835_v25 = vld [vmem:[%s1224_s5 + $0x3] ss:$0 sm:$0xff] }
 0x1b7   :  { %v204_v31 = vmax.f32 %v192_v28, 0.0  ;;  %v208_v34 = vpack.c.bf16 %v206_v29, %v205_v32 }
 0x1b9   :  { %v207_v33 = vpack.c.bf16 %v204_v31, %v203_v30 }
 0x1bb   :  { %937 = vmatprep.mubr.bf16.mxu0 %v207_v33 }
 0x1bc   :  { %938 = vmatmul.mubr.bf16.vlgmr.msra.gmra.mxu0 %v208_v34 }
 0x1bd   :  { %970 = vmatpush3.bf16.msra.mxu0 %v1045_v58 }
 0x1be   :  { %971 = vmatprep.subr.bf16.mxu0 %v1046_v59 }
 0x1c1   :  { %972 = vmatpush3.bf16.msra.mxu0 %v1046_v59 }
 0x1c2   :  { %973 = vmatprep.subr.bf16.mxu0 %v1047_v60 }
 0x1c5   :  { %974 = vmatpush3.bf16.msra.mxu0 %v1047_v60 }
 0x1c6   :  { %975 = vmatprep.subr.bf16.mxu0 %v1048_v61 }
 0x1c9   :  { %976 = vmatpush3.bf16.msra.mxu0 %v1048_v61 }
 0x1ca   :  { %977 = vmatprep.subr.bf16.mxu0 %v1049_v62 }
 0x1cd   :  { %978 = vmatpush3.bf16.msra.mxu0 %v1049_v62 }
 0x1ce   :  { %979 = vmatprep.subr.bf16.mxu0 %v1050_v5 }
 0x1d1   :  { %980 = vmatpush3.bf16.msra.mxu0 %v1050_v5 }
 0x1d2   :  { %981 = vmatprep.subr.bf16.mxu0 %v1051_v6 }
 0x1d5   :  { %982 = vmatpush3.bf16.msra.mxu0 %v1051_v6 }
 0x1d6   :  { %983 = vmatprep.subr.bf16.mxu0 %v1052_v7 }
 0x1d9   :  { %984 = vmatpush3.bf16.msra.mxu0 %v1052_v7 }
 0x27c   :  { %v939_v35 = vpop.f32.mrf.mxu0 }
 0x27d   :  { %v321_v38 = vadd.f32 %v939_v35, %v815_v36 }
 0x27e   :  { %v312_v37 = vpop.f32.mrf.mxu0 }
 0x27f   :  { %v313_v40 = vadd.f32 %v815_v36, %v312_v37  ;;  %v329_v43 = vmax.f32 %v321_v38, 0.0 }
 0x280   :  { %v940_v39 = vpop.f32.mrf.mxu0 }
 0x281   :  { %v324_v41 = vadd.f32 %v940_v39, %v815_v36  ;;  %v327_v46 = vmax.f32 %v313_v40, 0.0  ;;  %v632_v39 = vld [vmem:[%s1221_s2] sm:$0x1] }
 0x282   :  { %v315_v42 = vpop.f32.mrf.mxu0  ;;  %v1053_v40 = vld [vmem:[#allocation5 + $0xf8] sm:$0xff]  }
 0x283   :  { %v330_v44 = vmax.f32 %v324_v41, 0.0  ;;  %v316_v45 = vadd.f32 %v815_v36, %v315_v42  ;;  %v1054_v41 = vld [vmem:[#allocation5 + $0xf0] sm:$0xff]   ;;  %v1055_v42 = vld [vmem:[#allocation5 + $0xe8] sm:$0xff]  }
 0x285   :  { %v328_v47 = vmax.f32 %v316_v45, 0.0  ;;  %v332_v48 = vpack.c.bf16 %v330_v44, %v329_v43  ;;  %v1056_v43 = vld [vmem:[#allocation5 + $0xe0] sm:$0xff]   ;;  %v1057_v44 = vld [vmem:[#allocation5 + $0xd8] sm:$0xff]   ;;  %v1058_v45 = vld [vmem:[#allocation5 + $0xd0] sm:$0xff]  }
 0x287   :  { %v331_v49 = vpack.c.bf16 %v328_v47, %v327_v46  ;;  %941 = vmatprep.subr.bf16.mxu1 %v332_v48  ;;  %v1059_v46 = vld [vmem:[#allocation5 + $0xc8] sm:$0xff]   ;;  %v1060_v47 = vld [vmem:[#allocation5 + $0xc0] sm:$0xff]  }
 0x288   :  { %942 = vmatpush3.bf16.msra.mxu1 %v332_v48 }
 0x289   :  { %943 = vmatprep.subr.bf16.mxu1 %v331_v49 }
 0x28c   :  { %944 = vmatpush3.bf16.msra.mxu1 %v331_v49 }
 0x28d   :  { %949 = vmatprep.subr.bf16.mxu1 %v1037_v50 }
 0x28f   :  { %946 = vmatmul.mubr.msk.bf16.vlgmr.msra.gmra.mxu1 %vm147_vm2, %v1189_v12 }
 0x290   :  { %950 = vmatpush3.bf16.msra.mxu1 %v1037_v50 }
 0x291   :  { %951 = vmatprep.subr.bf16.mxu1 %v1038_v51 }
 0x294   :  { %952 = vmatpush3.bf16.msra.mxu1 %v1038_v51 }
 0x295   :  { %953 = vmatprep.subr.bf16.mxu1 %v1039_v52 }
 0x298   :  { %954 = vmatpush3.bf16.msra.mxu1 %v1039_v52 }
 0x299   :  { %955 = vmatprep.subr.bf16.mxu1 %v1040_v53 }
 0x29c   :  { %956 = vmatpush3.bf16.msra.mxu1 %v1040_v53  ;;  %v845_v53 = vld [vmem:[%s1224_s5 + $0x4] ss:$0 sm:$0xff] }
 0x29d   :  { %957 = vmatprep.subr.bf16.mxu1 %v1041_v54 }
 0x2a0   :  { %958 = vmatpush3.bf16.msra.mxu1 %v1041_v54 }
 0x2a1   :  { %959 = vmatprep.subr.bf16.mxu1 %v1042_v55 }
 0x2a4   :  { %960 = vmatpush3.bf16.msra.mxu1 %v1042_v55 }
 0x2a5   :  { %961 = vmatprep.subr.bf16.mxu1 %v1043_v56 }
 0x2a8   :  { %962 = vmatpush3.bf16.msra.mxu1 %v1043_v56 }
 0x2a9   :  { %963 = vmatprep.subr.bf16.mxu1 %v1044_v57 }
 0x2ac   :  { %964 = vmatpush3.bf16.msra.mxu1 %v1044_v57 }
 0x2ad   :  { %989 = vmatprep.subr.bf16.mxu1 %v1131_v23 }
 0x34f   :  { %v947_v63 = vpop.f32.mrf.mxu1 }
 0x351   :  { %v367_v0 = vpop.f32.mrf.mxu1 }
 0x353   :  { %v948_v1 = vpop.f32.mrf.mxu1 }
 0x354   :  { %v383_v4 = vpack.c.bf16 %v948_v1, %v947_v63 }
 0x355   :  { %v370_v2 = vpop.f32.mrf.mxu1 }
 0x356   :  { %v382_v3 = vpack.c.bf16 %v370_v2, %v367_v0 }
 0x358   :  { %965 = vmatprep.mubr.bf16.mxu1 %v382_v3 }
 0x359   :  { %966 = vmatmul.mubr.bf16.vlgmr.msra.gmra.mxu1 %v383_v4 }
 0x35a   :  { %993 = vmatprep.mubr.msk.bf16.mxu1 %vm1132_vm3, %v1131_v23 }
 0x419   :  { %v967_v8 = vpop.f32.mrf.mxu1 }
 0x41a   :  { %v497_v14 = vadd.f32 %v967_v8, %v826_v10 }
 0x41b   :  { %v488_v9 = vpop.f32.mrf.mxu1 }
 0x41c   :  { %v489_v12 = vadd.f32 %v826_v10, %v488_v9  ;;  %v505_v20 = vmax.f32 %v497_v14, 0.0 }
 0x41d   :  { %v968_v11 = vpop.f32.mrf.mxu1 }
 0x41e   :  { %v500_v13 = vadd.f32 %v968_v11, %v826_v10  ;;  %v503_v18 = vmax.f32 %v489_v12, 0.0 }
 0x41f   :  { %v491_v15 = vpop.f32.mrf.mxu1 }
 0x420   :  { %v492_v16 = vadd.f32 %v826_v10, %v491_v15  ;;  %v506_v17 = vmax.f32 %v500_v13, 0.0 }
 0x422   :  { %v504_v19 = vmax.f32 %v492_v16, 0.0  ;;  %v508_v22 = vpack.c.bf16 %v506_v17, %v505_v20 }
 0x424   :  { %v507_v21 = vpack.c.bf16 %v504_v19, %v503_v18 }
 0x426   :  { %985 = vmatprep.mubr.bf16.mxu0 %v507_v21 }
 0x427   :  { %986 = vmatmul.mubr.bf16.vlgmr.msra.gmra.mxu0 %v508_v22 }
 0x4e7   :  { %v987_v24 = vpop.f32.mrf.mxu0 }
 0x4e8   :  { %v622_v27 = vadd.f32 %v987_v24, %v835_v25 }
 0x4e9   :  { %v613_v26 = vpop.f32.mrf.mxu0 }
 0x4ea   :  { %v630_v31 = vmax.f32 %v622_v27, 0.0  ;;  %v614_v32 = vadd.f32 %v835_v25, %v613_v26 }
 0x4eb   :  { %v988_v28 = vpop.f32.mrf.mxu0 }
 0x4ec   :  { %v625_v29 = vadd.f32 %v988_v28, %v835_v25  ;;  %v628_v37 = vmax.f32 %v614_v32, 0.0 }
 0x4ed   :  { %v616_v30 = vpop.f32.mrf.mxu0 }
 0x4ee   :  { %v631_v33 = vmax.f32 %v625_v29, 0.0  ;;  %v617_v34 = vadd.f32 %v835_v25, %v616_v30 }
 0x4f0   :  { %v634_v35 = vpack.c.bf16 %v631_v33, %v630_v31  ;;  %v629_v36 = vmax.f32 %v617_v34, 0.0 }
 0x4f2   :  { %990 = vmatpush3.bf16.msra.mxu1 %v634_v35  ;;  %v633_v38 = vpack.c.bf16 %v629_v36, %v628_v37 }
 0x4f3   :  { %991 = vmatprep.subr.bf16.mxu1 %v1131_v23 }
 0x4f6   :  { %992 = vmatpush3.bf16.msra.mxu1 %v633_v38 }
 0x4f7   :  { %997 = vmatprep.subr.bf16.mxu1 %v1131_v23 }
 0x4f9   :  { %994 = vmatmul.mubr.msk.bf16.vlgmr.msra.gmra.mxu1 %vm147_vm2, %v632_v39 }
 0x4fa   :  { %998 = vmatpush3.bf16.msra.mxu1 %v1053_v40  ;;  %1013 = vmatprep.mubr.msk.bf16.mxu1 %vm1132_vm3, %v1131_v23 }
 0x4fb   :  { %999 = vmatprep.subr.bf16.mxu1 %v1131_v23 }
 0x4fe   :  { %1000 = vmatpush3.bf16.msra.mxu1 %v1054_v41 }
 0x4ff   :  { %1001 = vmatprep.subr.bf16.mxu1 %v1131_v23 }
 0x502   :  { %1002 = vmatpush3.bf16.msra.mxu1 %v1055_v42 }
 0x503   :  { %1003 = vmatprep.subr.bf16.mxu1 %v1131_v23 }
 0x506   :  { %1004 = vmatpush3.bf16.msra.mxu1 %v1056_v43 }
 0x507   :  { %1005 = vmatprep.subr.bf16.mxu1 %v1131_v23 }
 0x50a   :  { %1006 = vmatpush3.bf16.msra.mxu1 %v1057_v44 }
 0x50b   :  { %1007 = vmatprep.subr.bf16.mxu1 %v1131_v23 }
 0x50e   :  { %1008 = vmatpush3.bf16.msra.mxu1 %v1058_v45 }
 0x50f   :  { %1009 = vmatprep.subr.bf16.mxu1 %v1131_v23 }
 0x512   :  { %1010 = vmatpush3.bf16.msra.mxu1 %v1059_v46 }
 0x513   :  { %1011 = vmatprep.subr.bf16.mxu1 %v1131_v23 }
 0x516   :  { %1012 = vmatpush3.bf16.msra.mxu1 %v1060_v47 }
 0x5b9   :  { %v672_v48 = vpop.f32.mrf.mxu1 }
 0x5ba   :  { %v678_v49 = vpack.c.bf16 %v672_v48, %v672_v48 }
 0x5bb   :  { %v995_v50 = vpop.f32.mrf.mxu1 }
 0x5bc   :  { %1014 = vmatmul.mubr.bf16.vlgmr.msra.gmra.mxu1 %v678_v49 }
 0x5bd   :  { %v675_v51 = vpop.f32.mrf.mxu1 }
 0x5bf   :  { %v996_v52 = vpop.f32.mrf.mxu1 }
 0x67c   :  { %v783_v54 = vpop.f32.mrf.mxu1 }
 0x67d   :  { %v784_v55 = vadd.f32 %v845_v53, %v783_v54 }
 0x67e   :  { %v1015_v56 = vpop.f32.mrf.mxu1 }
 0x67f   :  { %789 = vst [vmem:[#allocation7] sm:$0x3] %v784_v55 }
 0x680   :  { %v786_v57 = vpop.f32.mrf.mxu1 }
 0x681   :  { %1112 = shalt.err (!%p1109_p0)
}
 0x682   :  { %799 = dma.vmem_to_hbm [thread:$0]  %s797_s25, 32, %s1225_s6, [#allocation4]   ;;  %v1016_v58 = vpop.f32.mrf.mxu1 }
 0x683   :  { %1125 = dma.done.wait [#allocation4], 32  }
 0x684   :  { %1126 = vsyncadd [#allocation4], 4294967264 }
 0x685   :  { %803 = vsyncpa [#allocation3], 1 }
 0x686   :  { %804 = vsyncpa [#allocation6], 1 }
 0x687   :  { %805 = vsyncpa [#allocation4], 1 }

</bundles_post_ra>
